<compile_context>
chip_gen: v6e
topology: v6e:2x2x1
jax: 0.10.0
libtpu: 0.0.40
codegen_flags: <defaults>
</compile_context>

<pallas_src>
import jax
import jax.numpy as jnp
from jax.experimental import pallas as pl
from jax.experimental.pallas import tpu as pltpu

_LANE = 128
_SMALL_BYTES = 256 * 1024              # <= 256 KiB per operand: one block, no grid
_TARGET_TILE_BYTES = 4 << 20           # ~4 MiB per buffer per pipeline stage
_VMEM_LIMIT_BYTES = 48 * 1024 * 1024   # fits v7x's 64 MiB physical VMEM w/ headroom
_MIN_GRID_STEPS = 4                    # balance v7x's 2 TCs + enable DMA overlap


def _residual_add_kernel(y_ref, x_ref, o_ref):
    # out = fn(x) + x   (elementwise, VPU; HBM-bandwidth bound)
    o_ref[...] = y_ref[...] + x_ref[...]


def _round_up(a, b):
    return (a + b - 1) // b * b


def _largest_divisor_leq(n, cap):
    return max(d for d in range(1, min(n, cap) + 1) if n % d == 0)


def _pallas_residual_add(y, x):
    """Elementwise y + x via a Pallas TPU kernel (matching shapes/dtypes)."""
    assert y.shape == x.shape, (y.shape, x.shape)
    assert y.dtype == x.dtype, (y.dtype, x.dtype)
    orig_shape, dtype = x.shape, x.dtype
    n = x.size
    if n == 0:
        return y
    itemsize = x.dtype.itemsize
    total_bytes = n * itemsize

    # ---------- small path: whole problem fits comfortably in VMEM ----------
    if total_bytes <= _SMALL_BYTES:
        if n % _LANE == 0:
            cols = max(c for c in (1024, 512, 256, 128) if n % c == 0)
            rows = n // cols
        else:
            rows, cols = 1, n      # tiny/ragged; sublane padding is a few KiB here
        out = pl.pallas_call(
            _residual_add_kernel,
            out_shape=jax.ShapeDtypeStruct((rows, cols), dtype),
            in_specs=[
                pl.BlockSpec(memory_space=pltpu.MemorySpace.VMEM),
                pl.BlockSpec(memory_space=pltpu.MemorySpace.VMEM),
            ],
            out_specs=pl.BlockSpec(memory_space=pltpu.MemorySpace.VMEM),
        )(y.reshape(rows, cols), x.reshape(rows, cols))
        return out.reshape(orig_shape)

    # ---------- large path: lane-dense slab, big tiles, pipelined grid ------
    if n % _LANE == 0:
        # Common conv-activation case: wide, 128-aligned lane dim, no copies.
        cols = max(c for c in (4096, 2048, 1024, 512, 256, 128) if n % c == 0)
    else:
        # Ragged: largest divisor <= 4096 as the (full-extent) last dim.  No
        # jnp.pad / output slice => no extra HBM passes; only cost is lane
        # padding inside VMEM and masked stores on the last lane chunk.
        # TODO(synk): near-prime flat sizes degenerate to a tiny last dim;
        # still correct (and rare) but VPU/DMA-inefficient.
        cols = _largest_divisor_leq(n, 4096)
    rows = n // cols

    # dtype-aware sublane multiple: 8 f32 / 16 bf16 / 32 int8-fp8.
    sub = max(8, 32 // itemsize)
    cols_pad = _round_up(cols, _LANE)          # VMEM footprint of one row

    # ~4 MiB per-buffer tiles, but at least ~4 near-equal grid steps so the
    # pipeline overlaps DMA with compute and both v7x TensorCores stay busy.
    max_tile_rows = max(sub, (_TARGET_TILE_BYTES // (cols_pad * itemsize)) // sub * sub)
    steps = max(pl.cdiv(rows, max_tile_rows),
                min(_MIN_GRID_STEPS, pl.cdiv(rows, sub)))
    tile_m = max(sub, min(max_tile_rows, _round_up(pl.cdiv(rows, steps), sub)))
    if tile_m >= rows:
        tile_m = rows                          # single full-extent block, 1 step
    grid = (pl.cdiv(rows, tile_m),)            # partial last block handled by Pallas

    out = pl.pallas_call(
        _residual_add_kernel,
        out_shape=jax.ShapeDtypeStruct((rows, cols), dtype),
        grid=grid,
        in_specs=[
            pl.BlockSpec((tile_m, cols), lambda i: (i, 0)),
            pl.BlockSpec((tile_m, cols), lambda i: (i, 0)),
        ],
        out_specs=pl.BlockSpec((tile_m, cols), lambda i: (i, 0)),
        compiler_params=pltpu.CompilerParams(
            dimension_semantics=("parallel",),
            vmem_limit_bytes=_VMEM_LIMIT_BYTES,
            # Let XLA fuse an elementwise fn-epilogue into the y-input read
            # under jit: removes fn(x)'s HBM round trip.
            allow_input_fusion=[True, False],
        ),
    )(y.reshape(rows, cols), x.reshape(rows, cols))
    return out.reshape(orig_shape)


class Residual:
    """JAX/Pallas port of `Residual`: __call__(x, *a, **kw) = fn(x, *a, **kw) + x."""

    def __init__(self, fn):
        self.fn = fn

    def __call__(self, x, *args, **kwargs):
        y = self.fn(x, *args, **kwargs)
        return _pallas_residual_add(y, x)


def make_conv_fn(channels, key):
    """Deterministic example inner fn: 3x3 same-padding Conv2d (NCHW)."""
    w = jax.random.normal(key, (channels, channels, 3, 3), jnp.float32) * 0.1
    b = jnp.zeros((channels,), jnp.float32)

    def fn(x):
        y = jax.lax.conv_general_dilated(
            x, w,
            window_strides=(1, 1),
            padding="SAME",
            dimension_numbers=("NCHW", "OIHW", "NCHW"),
        )
        return y + b[None, :, None, None]

    return fn


if __name__ == "__main__":
    key = jax.random.PRNGKey(0)
    k_x, k_w, k_x2, k_x3 = jax.random.split(key, 4)

    # 1) Small NCHW demo (exercises the single-block, no-grid path).
    x = jax.random.normal(k_x, (2, 4, 16, 16), jnp.float32)
    fn = make_conv_fn(channels=4, key=k_w)
    residual = Residual(fn)
    out = jax.block_until_ready(residual(x))
    ref = fn(x) + x
    assert out.shape == x.shape and out.dtype == x.dtype
    assert jnp.allclose(out, ref, atol=1e-5, rtol=1e-5), "small-path mismatch"

    # 2) 4 MiB tensor under jit: gridded/pipelined path + input-fusion of tanh.
    x2 = jax.random.normal(k_x2, (2, 8, 256, 256), jnp.float32)
    res2 = Residual(jnp.tanh)
    out2 = jax.block_until_ready(jax.jit(lambda a: res2(a))(x2))
    ref2 = jnp.tanh(x2) + x2
    assert out2.shape == x2.shape and out2.dtype == x2.dtype
    assert jnp.allclose(out2, ref2, atol=1e-5, rtol=1e-5), "tiled-path mismatch"

    # 3) Ragged flat size (not a multiple of 128): no-pad full-extent-cols path.
    x3 = jax.random.normal(k_x3, (3, 7, 97, 101), jnp.float32)
    fn3 = lambda a: 1.5 * a + 0.25
    res3 = Residual(fn3)
    out3 = jax.block_until_ready(res3(x3))
    ref3 = fn3(x3) + x3
    assert out3.shape == x3.shape and out3.dtype == x3.dtype
    assert jnp.allclose(out3, ref3, atol=1e-5, rtol=1e-5), "ragged-path mismatch"

    print("KERNEL_OK")
</pallas_src>

<mosaic_0001>
module attributes {stable_mosaic.version = 11 : i64} {
  func.func @_residual_add_kernel(%arg0: memref<2x1024xf32, #tpu.memory_space<vmem>>, %arg1: memref<2x1024xf32, #tpu.memory_space<vmem>>, %arg2: memref<2x1024xf32, #tpu.memory_space<vmem>>) attributes {dimension_semantics = [], scalar_prefetch = 0 : i64, scratch_operands = 0 : i64, tpu.core_type = #tpu.core_type<tc>} {
    %c0 = arith.constant 0 : index
    %c0_0 = arith.constant 0 : index
    %0 = vector.load %arg0[%c0, %c0_0] : memref<2x1024xf32, #tpu.memory_space<vmem>>, vector<2x1024xf32>
    %c0_1 = arith.constant 0 : index
    %c0_2 = arith.constant 0 : index
    %1 = vector.load %arg1[%c0_1, %c0_2] : memref<2x1024xf32, #tpu.memory_space<vmem>>, vector<2x1024xf32>
    %2 = arith.addf %0, %1 : vector<2x1024xf32>
    %c0_3 = arith.constant 0 : index
    %c0_4 = arith.constant 0 : index
    %3 = vector.load %arg2[%c0_3, %c0_4] : memref<2x1024xf32, #tpu.memory_space<vmem>>, vector<2x1024xf32>
    tpu.vector_store %arg2[%c0_3, %c0_4], %2 {strides = array<i32>} : memref<2x1024xf32, #tpu.memory_space<vmem>>, vector<2x1024xf32>,
    return
  }
}

</mosaic_0001>

<bundles_post_ra>
// kernel: tpu_custom_call.1
= control target key start
LH: loop header
LB: loop body
LE: loop exit
PB: predicated region body
PF: predicated region fallthrough
CT: control target
= control target key end

     0   :  { %7 = vsyncpa [#allocation3], 0  ;;  %s156_s0 = inlined_call_operand.hbm [shape: f32[2,1024], index: 0, kind: input, shape index: {}]   ;;  %s157_s1 = inlined_call_operand.hbm [shape: f32[2,1024], index: 1, kind: input, shape index: {}]   ;;  %s158_s2 = inlined_call_operand.hbm [shape: f32[2,1024], index: 2, kind: output, shape index: {}]  }
   0x1   :  { %8 = vsyncpa [#allocation6], 0 }
   0x2   :  { %9 = vsyncpa [#allocation4], 0  ;;  %s129_s9 = smov [#allocation2]   ;;  %s130_s11 = smov [#allocation5]  }
   0x3   :  { %s16_s10 = sshll.u32 %s129_s9, 4  ;;  %s26_s12 = sshll.u32 %s130_s11, 4  ;;  %s17_s10 = int_to_ptr.vmem [resolvable:$true] %s16_s10  ;;  %s27_s12 = int_to_ptr.vmem [resolvable:$true] %s26_s12 }
   0x4   :  { %s71_s13 = scalar_lea.vmem %s17_s10, 256  ;;  %p76_p1 = scmp.lt.s32.totalorder %s17_s10, %s17_s10 }
   0x5   :  { %p72_p0 = scmp.ne.s32.totalorder %s17_s10, %s71_s13  ;;  %p77_p2 = scmp.lt.s32.totalorder %s71_s13, %s71_s13 }
   0x7   :  { %p78_p3 = por %p77_p2, %p76_p1 }
   0x9   :  { %p79_p4 = pnand %p78_p3, %p72_p0 }
   0xb   :  { %82 = shalt.err (!%p79_p4)
}
   0xc   :  { %19 = dma.hbm_to_vmem [thread:$0]  %s156_s0, 256, %s17_s10, [#allocation3]  }
   0xd   :  { %s91_s16 = scalar_lea.vmem %s27_s12, 256  ;;  %p96_p6 = scmp.lt.s32.totalorder %s27_s12, %s27_s12 }
   0xe   :  { %p92_p5 = scmp.ne.s32.totalorder %s27_s12, %s91_s16  ;;  %p97_p7 = scmp.lt.s32.totalorder %s91_s16, %s91_s16 }
  0x10   :  { %p98_p8 = por %p97_p7, %p96_p6 }
  0x12   :  { %p99_p9 = pnand %p98_p8, %p92_p5 }
  0x14   :  { %102 = shalt.err (!%p99_p9)
}
  0x15   :  { %29 = dma.hbm_to_vmem [thread:$0]  %s157_s1, 256, %s27_s12, [#allocation6]  }
  0x16   :  { %123 = dma.done.wait [#allocation3], 256  }
  0x17   :  { %124 = vsyncadd [#allocation3], 4294967040 }
  0x18   :  { %125 = dma.done.wait [#allocation6], 256  }
  0x19   :  { %126 = vsyncadd [#allocation6], 4294967040  ;;  %s131_s19 = smov [#allocation7]   ;;  %v36_v0 = vld [vmem:[#allocation2] sm:$0xff]  ;;  %v38_v1 = vld [vmem:[#allocation5] sm:$0xff] }
  0x1a   :  { %s50_s20 = sshll.u32 %s131_s19, 4  ;;  %v37_v2 = vld [vmem:[#allocation2 + $0x8] sm:$0xff]  ;;  %v40_v3 = vadd.f32 %v38_v1, %v36_v0  ;;  %v39_v4 = vld [vmem:[#allocation5 + $0x8] sm:$0xff]  ;;  %s51_s20 = int_to_ptr.vmem [resolvable:$true] %s50_s20 }
  0x1b   :  { %v41_v5 = vadd.f32 %v39_v4, %v37_v2  ;;  %s103_s0 = scalar_lea.vmem %s51_s20, 256  ;;  %p108_p11 = scmp.lt.s32.totalorder %s51_s20, %s51_s20 }
  0x1c   :  { %42 = vst [vmem:[#allocation7] sm:$0xff] %v40_v3  ;;  %p104_p10 = scmp.ne.s32.totalorder %s51_s20, %s103_s0  ;;  %p109_p12 = scmp.lt.s32.totalorder %s103_s0, %s103_s0 }
  0x1d   :  { %43 = vst [vmem:[#allocation7 + $0x8] sm:$0xff] %v41_v5 }
  0x1e   :  { %p110_p13 = por %p109_p12, %p108_p11 }
  0x20   :  { %p111_p0 = pnand %p110_p13, %p104_p10 }
  0x22   :  { %114 = shalt.err (!%p111_p0)
}
  0x23   :  { %53 = dma.vmem_to_hbm [thread:$0]  %s51_s20, 256, %s158_s2, [#allocation4]  }
  0x24   :  { %127 = dma.done.wait [#allocation4], 256  }
  0x25   :  { %128 = vsyncadd [#allocation4], 4294967040 }
  0x26   :  { %57 = vsyncpa [#allocation3], 1 }
  0x27   :  { %58 = vsyncpa [#allocation6], 1 }
  0x28   :  { %59 = vsyncpa [#allocation4], 1 }

</bundles_post_ra>
